<compile_context>
chip_gen: v5e
topology: v5e:2x2
jax: 0.10.0
libtpu: 0.0.40
codegen_flags: <defaults>
</compile_context>

<pallas_src>
import jax
import jax.numpy as jnp
from jax.experimental import pallas as pl
from jax.experimental.pallas import tpu as pltpu


_LANE = 128
_TARGET_BLOCK_BYTES = 2 * 1024 * 1024   # ~2 MiB per x block (sweepable)
_MAX_B_TILE = 8                         # cap on batch folding (static kernel loop)
_MIN_ELEMS_FOR_PALLAS = 64 * 1024       # below this, XLA fusion beats launch cost


def _perm1d_kernel(w_ref, x_ref, o_ref):
    # w_ref: (C, C) resident weight; x_ref/o_ref: (b_tile, C, tile_t) block.
    w = w_ref[...]
    for b in range(x_ref.shape[0]):   # b_tile is a small static constant (<= 8)
        o_ref[b] = jnp.dot(
            w, x_ref[b], preferred_element_type=jnp.float32
        ).astype(o_ref.dtype)


def _round_up(n, m):
    return ((n + m - 1) // m) * m


def _vmem_budget_bytes():
    """~75% of physical VMEM (96 MiB v5e/v6e, 48 MiB v7x); safe fallback 48 MiB."""
    cap = None
    try:
        cap = getattr(pltpu.get_tpu_info(), "vmem_capacity_bytes", None)
    except Exception:
        cap = None
    if not cap:
        return 48 * 1024 * 1024
    return max(int(cap) * 3 // 4, 32 * 1024 * 1024)


def permutation1d_forward(x, W, *, target_block_bytes=_TARGET_BLOCK_BYTES,
                          min_elems_for_pallas=_MIN_ELEMS_FOR_PALLAS):
    """x: (B, C, T), W: (C, C) -> (y: (B, C, T), dlog_det: scalar)."""
    B, C, T = x.shape
    out_dtype = x.dtype

    # Scalar glue: slogdet (LU) on a tiny matrix -> plain JAX, always f32.
    _, log_det_W = jnp.linalg.slogdet(W.astype(jnp.float32))
    dlog_det = T * log_det_W

    # Consistent dtype on both dispatch paths: W in x's dtype, f32 accumulate.
    W_x = W.astype(out_dtype)

    # Tiny problems: pallas_call fixed costs dominate; let XLA handle/fuse.
    if B * C * T < min_elems_for_pallas:
        y = jnp.einsum(
            "oc,bct->bot", W_x, x, preferred_element_type=jnp.float32
        ).astype(out_dtype)
        return y, dlog_det

    dtype_bytes = jnp.dtype(out_dtype).itemsize
    vmem_budget = _vmem_budget_bytes()

    # Clamp block bytes so double-buffered x + y tiles (+ resident W) fit VMEM
    # with headroom; matters on v7x (64 MiB physical) for large C.
    w_bytes = 2 * C * C * dtype_bytes
    max_block_bytes = max((vmem_budget - w_bytes) // 6, _LANE * C * dtype_bytes)
    block_bytes = min(target_block_bytes, max_block_bytes)

    # Time tile: byte-targeted, multiple of 128 lanes, no larger than T
    # rounded up to one lane group (partial tail block is masked by Pallas).
    t_cap = _round_up(T, _LANE)
    tile_t = max((block_bytes // (C * dtype_bytes)) // _LANE * _LANE, _LANE)
    tile_t = min(tile_t, t_cap)

    # Batch folding when the time axis alone can't fill the byte target.
    x_tile_bytes = C * tile_t * dtype_bytes
    b_tile = 1
    if x_tile_bytes < block_bytes:
        b_tile = int(min(B, _MAX_B_TILE, max(block_bytes // x_tile_bytes, 1)))

    grid = (pl.cdiv(B, b_tile), pl.cdiv(T, tile_t))

    cost = pl.CostEstimate(
        flops=2 * B * C * C * T,
        bytes_accessed=2 * B * C * T * dtype_bytes + C * C * dtype_bytes,
        transcendentals=0,
    )

    y = pl.pallas_call(
        _perm1d_kernel,
        out_shape=jax.ShapeDtypeStruct((B, C, T), out_dtype),
        grid_spec=pltpu.PrefetchScalarGridSpec(
            num_scalar_prefetch=0,
            grid=grid,
            in_specs=[
                pl.BlockSpec((C, C), lambda bi, ti: (0, 0)),               # W resident
                pl.BlockSpec((b_tile, C, tile_t), lambda bi, ti: (bi, 0, ti)),
            ],
            out_specs=pl.BlockSpec((b_tile, C, tile_t), lambda bi, ti: (bi, 0, ti)),
        ),
        compiler_params=pltpu.CompilerParams(
            # Both axes independent -> megacore sharding where available.
            dimension_semantics=("parallel", "parallel"),
            vmem_limit_bytes=vmem_budget,
        ),
        cost_estimate=cost,
    )(W_x, x)

    return y, dlog_det


def make_permutation_weight(c, key):
    """Deterministic orthogonal W with det(W) = +1, matching the torch __init__."""
    g = jax.random.normal(key, (c, c), dtype=jnp.float32)
    W, _ = jnp.linalg.qr(g)
    det = jnp.linalg.det(W)
    W = jnp.where(det < 0, W.at[:, 0].set(-W[:, 0]), W)
    return W


if __name__ == "__main__":
    key = jax.random.PRNGKey(0)
    k_w, k_x = jax.random.split(key)

    # Small shapes; T deliberately NOT a multiple of 128 to exercise the
    # masked-tail (cdiv grid) path, and small enough to trigger batch folding.
    batch, channels, time = 2, 8, 200
    W = make_permutation_weight(channels, k_w)
    x = jax.random.normal(k_x, (batch, channels, time), dtype=jnp.float32)

    # Force the Pallas path (default dispatch routes this tiny shape to XLA).
    y, dlog_det = permutation1d_forward(x, W, min_elems_for_pallas=0)
    jax.block_until_ready(y)
    jax.block_until_ready(dlog_det)

    # Reference check in plain JAX (einsum == conv1d with 1x1 kernel).
    y_ref = jnp.einsum("oc,bct->bot", W, x)
    dlog_ref = time * jnp.linalg.slogdet(W)[1]
    assert y.shape == (batch, channels, time)
    assert y.dtype == x.dtype
    assert jnp.allclose(y, y_ref, atol=1e-5, rtol=1e-5)
    assert jnp.allclose(dlog_det, dlog_ref, atol=1e-5, rtol=1e-5)

    # Auto-dispatch path (XLA einsum for tiny shapes) must agree, incl. dtype.
    y_auto, dlog_auto = permutation1d_forward(x, W)
    jax.block_until_ready(y_auto)
    assert y_auto.dtype == x.dtype
    assert jnp.allclose(y_auto, y_ref, atol=1e-5, rtol=1e-5)
    assert jnp.allclose(dlog_auto, dlog_ref, atol=1e-5, rtol=1e-5)

    print("KERNEL_OK")
</pallas_src>

<mosaic_0001>
module attributes {stable_mosaic.version = 11 : i64} {
  func.func @_perm1d_kernel(%arg0: i32, %arg1: i32, %arg2: memref<8x8xf32, #tpu.memory_space<vmem>>, %arg3: memref<2x8x256xf32, #tpu.memory_space<vmem>>, %arg4: memref<2x8x256xf32, #tpu.memory_space<vmem>>) attributes {dimension_semantics = [#tpu.dimension_semantics<parallel>, #tpu.dimension_semantics<parallel>], iteration_bounds = array<i64: 1, 1>, scalar_prefetch = 0 : i64, scratch_operands = 0 : i64, tpu.core_type = #tpu.core_type<tc>, window_params = [{pipeline_mode = #tpu.pipeline_mode<synchronous>, transform_indices = @transform_0, window_bounds = array<i64: 8, 8>}, {transform_indices = @transform_1, window_bounds = array<i64: 2, 8, 256>}, {transform_indices = @transform_2, window_bounds = array<i64: 2, 8, 256>}]} {
    %c0 = arith.constant 0 : index
    %c0_0 = arith.constant 0 : index
    %0 = vector.load %arg2[%c0, %c0_0] : memref<8x8xf32, #tpu.memory_space<vmem>>, vector<8x8xf32>
    %c0_1 = arith.constant 0 : index
    %c0_2 = arith.constant 0 : index
    %c0_3 = arith.constant 0 : index
    %1 = vector.load %arg3[%c0_1, %c0_2, %c0_3] : memref<2x8x256xf32, #tpu.memory_space<vmem>>, vector<1x8x256xf32>
    %2 = vector.shape_cast %1 : vector<1x8x256xf32> to vector<8x256xf32>
    %cst = arith.constant dense<0.000000e+00> : vector<8x256xf32>
    %3 = tpu.matmul %0, %2, %cst {dimension_numbers = #tpu.dot_dimension_numbers<[1], [0], [0], [1], [0, 0, 1, 1], [], []>} : vector<8x8xf32>, vector<8x256xf32>, vector<8x256xf32> -> vector<8x256xf32>
    %c0_4 = arith.constant 0 : index
    %c0_5 = arith.constant 0 : index
    %c0_6 = arith.constant 0 : index
    %4 = vector.load %arg4[%c0_4, %c0_5, %c0_6] : memref<2x8x256xf32, #tpu.memory_space<vmem>>, vector<1x8x256xf32>
    %5 = vector.shape_cast %4 : vector<1x8x256xf32> to vector<8x256xf32>
    %6 = vector.shape_cast %3 : vector<8x256xf32> to vector<1x8x256xf32>
    tpu.vector_store %arg4[%c0_4, %c0_5, %c0_6], %6 {strides = array<i32>} : memref<2x8x256xf32, #tpu.memory_space<vmem>>, vector<1x8x256xf32>,
    %c1 = arith.constant 1 : index
    %c0_7 = arith.constant 0 : index
    %c0_8 = arith.constant 0 : index
    %7 = vector.load %arg3[%c1, %c0_7, %c0_8] : memref<2x8x256xf32, #tpu.memory_space<vmem>>, vector<1x8x256xf32>
    %8 = vector.shape_cast %7 : vector<1x8x256xf32> to vector<8x256xf32>
    %cst_9 = arith.constant dense<0.000000e+00> : vector<8x256xf32>
    %9 = tpu.matmul %0, %8, %cst_9 {dimension_numbers = #tpu.dot_dimension_numbers<[1], [0], [0], [1], [0, 0, 1, 1], [], []>} : vector<8x8xf32>, vector<8x256xf32>, vector<8x256xf32> -> vector<8x256xf32>
    %c1_10 = arith.constant 1 : index
    %c0_11 = arith.constant 0 : index
    %c0_12 = arith.constant 0 : index
    %10 = vector.load %arg4[%c1_10, %c0_11, %c0_12] : memref<2x8x256xf32, #tpu.memory_space<vmem>>, vector<1x8x256xf32>
    %11 = vector.shape_cast %10 : vector<1x8x256xf32> to vector<8x256xf32>
    %12 = vector.shape_cast %9 : vector<8x256xf32> to vector<1x8x256xf32>
    tpu.vector_store %arg4[%c1_10, %c0_11, %c0_12], %12 {strides = array<i32>} : memref<2x8x256xf32, #tpu.memory_space<vmem>>, vector<1x8x256xf32>,
    return
  }
  func.func @transform_0(%arg0: i32, %arg1: i32) -> (i32, i32) {
    %c0_i32 = arith.constant 0 : i32
    %c0_i32_0 = arith.constant 0 : i32
    %c0_i32_1 = arith.constant 0 : i32
    return %c0_i32, %c0_i32_0 : i32, i32
  }
  func.func @transform_1(%arg0: i32, %arg1: i32) -> (i32, i32, i32) {
    %c0_i32 = arith.constant 0 : i32
    %c0_i32_0 = arith.constant 0 : i32
    return %arg0, %c0_i32, %arg1 : i32, i32, i32
  }
  func.func @transform_2(%arg0: i32, %arg1: i32) -> (i32, i32, i32) {
    %c0_i32 = arith.constant 0 : i32
    %c0_i32_0 = arith.constant 0 : i32
    return %arg0, %c0_i32, %arg1 : i32, i32, i32
  }
}

</mosaic_0001>

<bundles_post_ra>
// kernel: tpu_custom_call.1
= control target key start
LH: loop header
LB: loop body
LE: loop exit
PB: predicated region body
PF: predicated region fallthrough
CT: control target
= control target key end

     0   :  { %7 = vsyncpa [#allocation3], 0  ;;  %s279_s0 = inlined_call_operand.hbm [shape: f32[8,8], index: 0, kind: input, shape index: {}]   ;;  %s280_s1 = inlined_call_operand.hbm [shape: f32[2,8,200], index: 1, kind: input, shape index: {}]   ;;  %s281_s2 = inlined_call_operand.hbm [shape: f32[2,8,200], index: 2, kind: output, shape index: {}]  }
   0x1   :  { %8 = vsyncpa [#allocation6], 0 }
   0x2   :  { %9 = vsyncpa [#allocation4], 0  ;;  %s15_s11 = sshll.u32 %s279_s0, 4  ;;  %s244_s12 = smov [#allocation2]   ;;  %s16_s11 = int_to_ptr.hbm [resolvable:$true] %s15_s11 }
   0x3   :  { %s17_s13 = sshll.u32 %s244_s12, 4  ;;  %s25_s16 = sshll.u32 %s280_s1, 4  ;;  %s18_s13 = int_to_ptr.vmem [resolvable:$true] %s17_s13  ;;  %s26_s16 = int_to_ptr.hbm [resolvable:$true] %s25_s16 }
   0x4   :  { %20 = dma.hbm_to_vmem [thread:$0]  %s16_s11, 128, %s18_s13, [#allocation3]  }
   0x5   :  { %s245_s17 = smov [#allocation5]   ;;  %s246_s19 = smov 256  }
   0x6   :  { %s27_s18 = sshll.u32 %s245_s17, 4  ;;  %s247_s20 = smov 16   ;;  %s28_s18 = int_to_ptr.vmem [resolvable:$true] %s27_s18 }
   0x7   :  { %33 = dma.hbm_to_vmem [thread:$0]  %s26_s16, 512, %s28_s18, [#allocation6], %s246_s19, %s246_s19, %s247_s20  }
   0x8   :  { %238 = dma.done.wait [#allocation3], 128  }
   0x9   :  { %239 = vsyncadd [#allocation3], 4294967168 }
   0xa   :  { %240 = dma.done.wait [#allocation6], 512  }
   0xb   :  { %241 = vsyncadd [#allocation6], 4294966784  ;;  %vm45_vm0 = vcmask 64512   ;;  %v92_v0 = vld [vmem:[#allocation5 + $0x10] sm:$0xff]  ;;  %v93_v1 = vld [vmem:[#allocation5 + $0x18] sm:$0xff]  ;;  %s248_s0 = smov [#allocation7]  }
   0xc   :  { %v42_v2 = vld [vmem:[#allocation2] sm:$0xff]  ;;  %109 = vmatpush.msra.mxu2 %v92_v0  ;;  %129 = vmatpush.msra.mxu3 %v93_v1  ;;  %v43_v3 = vld [vmem:[#allocation5] sm:$0xff]  ;;  %v44_v4 = vld [vmem:[#allocation5 + $0x8] sm:$0xff]  ;;  %s141_s1 = sshll.u32 %s248_s0, 4  ;;  %s143_s23 = sshll.u32 %s281_s2, 4  ;;  %s142_s1 = int_to_ptr.vmem [resolvable:$true] %s141_s1  ;;  %s144_s23 = int_to_ptr.hbm [resolvable:$true] %s143_s23 }
   0xd   :  { %159 = vmatmul.msk.f32.vlgmr.msra.gmra.mxu2 %vm45_vm0, %v42_v2  ;;  %160 = vmatmul.msk.f32.vlgmr.msra.gmra.mxu3 %vm45_vm0, %v42_v2 }
   0xe   :  { %64 = vmatpush.msra.mxu0 %v43_v3  ;;  %84 = vmatpush.msra.mxu1 %v44_v4 }
   0xf   :  { %157 = vmatmul.msk.f32.vlgmr.msra.gmra.mxu0 %vm45_vm0, %v42_v2  ;;  %158 = vmatmul.msk.f32.vlgmr.msra.gmra.mxu1 %vm45_vm0, %v42_v2 }
  0x8c   :  { %v66_v5 = vpop.f32.mrf.mxu0  ;;  %v86_v6 = vpop.f32.mrf.mxu1 }
  0x8d   :  { %89 = vst [vmem:[#allocation7] sm:$0xff] %v66_v5 }
  0x8e   :  { %90 = vst [vmem:[#allocation7 + $0x8] sm:$0xff] %v86_v6 }
  0x90   :  { %v111_v7 = vpop.f32.mrf.mxu2  ;;  %v131_v8 = vpop.f32.mrf.mxu3 }
  0x91   :  { %135 = vst [vmem:[#allocation7 + $0x10] sm:$0xff] %v111_v7 }
  0x92   :  { %136 = vst [vmem:[#allocation7 + $0x18] sm:$0xff] %v131_v8 }
  0x93   :  { %149 = dma.vmem_to_hbm [thread:$0]  %s142_s1, 512, %s144_s23, [#allocation4], %s246_s19, %s246_s19, %s247_s20  }
  0x94   :  { %242 = dma.done.wait [#allocation4], 512  }
  0x95   :  { %243 = vsyncadd [#allocation4], 4294966784 }
  0x96   :  { %154 = vsyncpa [#allocation3], 1 }
  0x97   :  { %155 = vsyncpa [#allocation6], 1 }
  0x98   :  { %156 = vsyncpa [#allocation4], 1 }

</bundles_post_ra>
